<compile_context>
chip_gen: v7x
topology: tpu7x:2x2x1
jax: 0.10.0
libtpu: 0.0.40
codegen_flags: <defaults>
</compile_context>

<pallas_src>
import functools

import jax
import jax.numpy as jnp
from jax.experimental import pallas as pl
from jax.experimental.pallas import tpu as pltpu


def _round_up(x, m):
    return (x + m - 1) // m * m


def _choose_tk(I, tk):
    """Pick the intermediate-dim tile. Must divide I and be a multiple of 128 (or == I)."""
    if tk is not None:
        if I % tk != 0 or (tk % 128 != 0 and tk != I):
            raise ValueError("tk must divide I and be a multiple of 128 (or equal I)")
        return tk
    if I <= 1024:
        return I                      # small weight: keep fully resident, single K step
    for cand in (512, 256, 128):
        if I % cand == 0:
            return cand
    return I


def _bert_output_kernel(*refs, has_ffn, eps):
    if has_ffn:
        (x_ref, w_ref, b_ref, ffn_ref, resid_ref, gamma_ref, beta_ref,
         out_ref, acc_ref) = refs
    else:
        (x_ref, w_ref, b_ref, resid_ref, gamma_ref, beta_ref,
         out_ref, acc_ref) = refs
        ffn_ref = None

    k = pl.program_id(1)

    @pl.when(k == 0)
    def _():
        acc_ref[...] = jnp.zeros_like(acc_ref)

    # dense: (tm, tk) @ (tk, H) partial product on the MXU, accumulated in f32
    acc_ref[...] += jnp.dot(x_ref[...], w_ref[...],
                            preferred_element_type=jnp.float32)

    @pl.when(k == pl.num_programs(1) - 1)
    def _():
        h = acc_ref[...] + b_ref[...].astype(jnp.float32)
        if has_ffn:
            h = h + ffn_ref[...].astype(jnp.float32)
        # TODO(synk): training-mode dropout (random mask) not implemented; nn.Dropout
        # is an identity in eval mode, which is what is reproduced here.
        h = h + resid_ref[...].astype(jnp.float32)
        # LayerNorm over hidden axis in f32; fold gamma into the rsqrt scale.
        mean = jnp.mean(h, axis=-1, keepdims=True)
        centered = h - mean
        var = jnp.mean(centered * centered, axis=-1, keepdims=True)
        scale = jax.lax.rsqrt(var + eps) * gamma_ref[...].astype(jnp.float32)
        out_ref[...] = (centered * scale
                        + beta_ref[...].astype(jnp.float32)).astype(out_ref.dtype)


def bert_output_forward(hidden_states, input_tensor, params,
                        layerwise_hidden_ffn=None, *, eps=1e-12, tm=256, tk=None):
    """hidden_states: (B, S, intermediate); input_tensor: (B, S, hidden) -> (B, S, hidden)."""
    w, b, gamma, beta = params["w"], params["b"], params["gamma"], params["beta"]
    B, S, I = hidden_states.shape
    H = w.shape[1]
    out_dtype = jnp.result_type(hidden_states.dtype, input_tensor.dtype)
    has_ffn = layerwise_hidden_ffn is not None

    # token-major 2D layout: (B*S, D), last dim on TPU lanes
    x2 = hidden_states.reshape(B * S, I)
    r2 = input_tensor.reshape(B * S, H)
    f2 = None
    if has_ffn:
        ffn = layerwise_hidden_ffn
        if ffn.shape[1] != S:            # matches torch: add sliced [:, :S]
            ffn = ffn[:, :S]             # single slice; fuses away if caller jits
        f2 = ffn.reshape(B * S, H)

    # row tile: large by default, clamped to the (8-aligned) token count; pad the tail
    N = B * S
    tm_eff = _round_up(min(tm, N), 8)
    N_pad = _round_up(N, tm_eff)
    if N_pad != N:
        pad = N_pad - N
        x2 = jnp.pad(x2, ((0, pad), (0, 0)))
        r2 = jnp.pad(r2, ((0, pad), (0, 0)))
        if has_ffn:
            f2 = jnp.pad(f2, ((0, pad), (0, 0)))

    tk_eff = _choose_tk(I, tk)

    # (1, H) layout for the broadcast vectors
    b2 = b.reshape(1, H)
    g2 = gamma.reshape(1, H)
    be2 = beta.reshape(1, H)

    in_specs = [
        pl.BlockSpec((tm_eff, tk_eff), lambda i, k: (i, k)),   # x tile
        pl.BlockSpec((tk_eff, H), lambda i, k: (k, 0)),        # weight slab
        pl.BlockSpec((1, H), lambda i, k: (0, 0)),             # bias
    ]
    operands = [x2, w, b2]
    if has_ffn:
        in_specs.append(pl.BlockSpec((tm_eff, H), lambda i, k: (i, 0)))  # ffn tile
        operands.append(f2)
    in_specs += [
        pl.BlockSpec((tm_eff, H), lambda i, k: (i, 0)),        # residual tile
        pl.BlockSpec((1, H), lambda i, k: (0, 0)),             # gamma
        pl.BlockSpec((1, H), lambda i, k: (0, 0)),             # beta
    ]
    operands += [r2, g2, be2]

    # VMEM budget (double-buffered streamed tiles + weight slab + f32 accumulator)
    isz = lambda a: jnp.dtype(a.dtype).itemsize
    est = (2 * tm_eff * tk_eff * isz(x2)
           + 2 * tk_eff * H * isz(w)
           + (2 + (2 if has_ffn else 0)) * tm_eff * H * isz(r2)
           + 2 * tm_eff * H * jnp.dtype(out_dtype).itemsize
           + tm_eff * H * 4
           + 6 * 8 * _round_up(H, 128) * 4)
    vmem_limit = int(max(32 * 1024 * 1024,
                         min(1.5 * est + (8 << 20), 100 * 1024 * 1024)))

    kernel = functools.partial(_bert_output_kernel, has_ffn=has_ffn, eps=eps)

    out = pl.pallas_call(
        kernel,
        out_shape=jax.ShapeDtypeStruct((N_pad, H), out_dtype),
        grid_spec=pltpu.PrefetchScalarGridSpec(
            num_scalar_prefetch=0,
            grid=(N_pad // tm_eff, I // tk_eff),
            in_specs=in_specs,
            out_specs=pl.BlockSpec((tm_eff, H), lambda i, k: (i, 0)),
            scratch_shapes=[pltpu.VMEM((tm_eff, H), jnp.float32)],
        ),
        compiler_params=pltpu.CompilerParams(
            dimension_semantics=("parallel", "arbitrary"),
            vmem_limit_bytes=vmem_limit),
    )(*operands)

    return out[:N].reshape(B, S, H)


def _reference(hidden_states, input_tensor, params, layerwise_hidden_ffn, eps):
    h = hidden_states @ params["w"] + params["b"]
    if layerwise_hidden_ffn is not None:
        if layerwise_hidden_ffn.shape[1] != h.shape[1]:
            h = h + layerwise_hidden_ffn[:, :h.shape[1]]
        else:
            h = h + layerwise_hidden_ffn
    h = h + input_tensor
    mu = jnp.mean(h, axis=-1, keepdims=True)
    var = jnp.mean((h - mu) ** 2, axis=-1, keepdims=True)
    return (h - mu) * jax.lax.rsqrt(var + eps) * params["gamma"] + params["beta"]


if __name__ == "__main__":
    # Small BERT-ish config: batch=2, seq=8, intermediate=256, hidden=128
    B, S, I, H = 2, 8, 256, 128
    eps = 1e-12

    key = jax.random.PRNGKey(0)
    k1, k2, k3, k4, k5 = jax.random.split(key, 5)

    params = {
        "w": jax.random.normal(k1, (I, H), jnp.float32) * 0.02,   # dense.weight.T
        "b": jax.random.normal(k2, (H,), jnp.float32) * 0.02,     # dense.bias
        "gamma": jnp.ones((H,), jnp.float32),                     # LayerNorm.weight
        "beta": jnp.zeros((H,), jnp.float32),                     # LayerNorm.bias
    }
    hidden_states = jax.random.normal(k3, (B, S, I), jnp.float32)
    input_tensor = jax.random.normal(k4, (B, S, H), jnp.float32)
    # layerwise ffn with a longer seq dim to exercise the slicing branch
    layerwise_hidden_ffn = jax.random.normal(k5, (B, S + 4, H), jnp.float32)

    # 1) f32, no layerwise ffn (specialized path: no zeros stream), single K step
    out0 = bert_output_forward(hidden_states, input_tensor, params, None, eps=eps)
    jax.block_until_ready(out0)
    ref0 = _reference(hidden_states, input_tensor, params, None, eps)
    assert jnp.allclose(out0, ref0, atol=1e-5, rtol=1e-5)

    # 2) f32, with layerwise ffn (seq mismatch -> sliced add), K-tiled reduction axis
    out1 = bert_output_forward(hidden_states, input_tensor, params,
                               layerwise_hidden_ffn, eps=eps, tk=128)
    jax.block_until_ready(out1)
    ref1 = _reference(hidden_states, input_tensor, params, layerwise_hidden_ffn, eps)
    assert jnp.allclose(out1, ref1, atol=1e-5, rtol=1e-5)

    # 3) bf16 activations/weights streamed as-is; f32 accumulate + f32 LN inside kernel
    params_bf16 = dict(params,
                       w=params["w"].astype(jnp.bfloat16),
                       b=params["b"].astype(jnp.bfloat16))
    hs_bf16 = hidden_states.astype(jnp.bfloat16)
    it_bf16 = input_tensor.astype(jnp.bfloat16)
    out2 = bert_output_forward(hs_bf16, it_bf16, params_bf16, None, eps=eps)
    jax.block_until_ready(out2)
    assert out2.dtype == jnp.bfloat16
    ref2 = _reference(hs_bf16.astype(jnp.float32), it_bf16.astype(jnp.float32),
                      dict(params,
                           w=params_bf16["w"].astype(jnp.float32),
                           b=params_bf16["b"].astype(jnp.float32)),
                      None, eps)
    assert jnp.allclose(out2.astype(jnp.float32), ref2, atol=5e-2, rtol=5e-2)

    print("KERNEL_OK")
</pallas_src>

<mosaic_0001>
module attributes {stable_mosaic.version = 11 : i64} {
  func.func @_bert_output_kernel(%arg0: i32, %arg1: i32, %arg2: memref<16x256xf32, #tpu.memory_space<vmem>>, %arg3: memref<256x128xf32, #tpu.memory_space<vmem>>, %arg4: memref<1x128xf32, #tpu.memory_space<vmem>>, %arg5: memref<16x128xf32, #tpu.memory_space<vmem>>, %arg6: memref<1x128xf32, #tpu.memory_space<vmem>>, %arg7: memref<1x128xf32, #tpu.memory_space<vmem>>, %arg8: memref<16x128xf32, #tpu.memory_space<vmem>>, %arg9: memref<16x128xf32, #tpu.memory_space<vmem>>) attributes {dimension_semantics = [#tpu.dimension_semantics<parallel>, #tpu.dimension_semantics<arbitrary>], iteration_bounds = array<i64: 1, 1>, scalar_prefetch = 0 : i64, scratch_operands = 1 : i64, tpu.core_type = #tpu.core_type<tc>, window_params = [{transform_indices = @transform_0, window_bounds = array<i64: 16, 256>}, {transform_indices = @transform_1, window_bounds = array<i64: 256, 128>}, {pipeline_mode = #tpu.pipeline_mode<synchronous>, transform_indices = @transform_2, window_bounds = array<i64: 1, 128>}, {transform_indices = @transform_3, window_bounds = array<i64: 16, 128>}, {pipeline_mode = #tpu.pipeline_mode<synchronous>, transform_indices = @transform_4, window_bounds = array<i64: 1, 128>}, {pipeline_mode = #tpu.pipeline_mode<synchronous>, transform_indices = @transform_5, window_bounds = array<i64: 1, 128>}, {transform_indices = @transform_6, window_bounds = array<i64: 16, 128>}]} {
    %c0_i32 = arith.constant 0 : i32
    %0 = arith.cmpi eq, %arg1, %c0_i32 : i32
    %1 = arith.extui %0 : i1 to i32
    %c0_i32_0 = arith.constant 0 : i32
    %2 = arith.cmpi ne, %1, %c0_i32_0 : i32
    scf.if %2 {
      %cst_10 = arith.constant 0.000000e+00 : f32
      %12 = vector.broadcast %cst_10 : f32 to vector<16x128xf32>
      %c0_11 = arith.constant 0 : index
      %c0_12 = arith.constant 0 : index
      %13 = vector.load %arg9[%c0_11, %c0_12] : memref<16x128xf32, #tpu.memory_space<vmem>>, vector<16x128xf32>
      tpu.vector_store %arg9[%c0_11, %c0_12], %12 {strides = array<i32>} : memref<16x128xf32, #tpu.memory_space<vmem>>, vector<16x128xf32>,
    } else {
    }
    %c0 = arith.constant 0 : index
    %c0_1 = arith.constant 0 : index
    %3 = vector.load %arg9[%c0, %c0_1] : memref<16x128xf32, #tpu.memory_space<vmem>>, vector<16x128xf32>
    %c0_2 = arith.constant 0 : index
    %c0_3 = arith.constant 0 : index
    %4 = vector.load %arg2[%c0_2, %c0_3] : memref<16x256xf32, #tpu.memory_space<vmem>>, vector<16x256xf32>
    %c0_4 = arith.constant 0 : index
    %c0_5 = arith.constant 0 : index
    %5 = vector.load %arg3[%c0_4, %c0_5] : memref<256x128xf32, #tpu.memory_space<vmem>>, vector<256x128xf32>
    %cst = arith.constant dense<0.000000e+00> : vector<16x128xf32>
    %6 = tpu.matmul %4, %5, %cst {dimension_numbers = #tpu.dot_dimension_numbers<[1], [0], [0], [1], [0, 0, 1, 1], [], []>} : vector<16x256xf32>, vector<256x128xf32>, vector<16x128xf32> -> vector<16x128xf32>
    %7 = arith.addf %3, %6 : vector<16x128xf32>
    %c0_6 = arith.constant 0 : index
    %c0_7 = arith.constant 0 : index
    %8 = vector.load %arg9[%c0_6, %c0_7] : memref<16x128xf32, #tpu.memory_space<vmem>>, vector<16x128xf32>
    tpu.vector_store %arg9[%c0_6, %c0_7], %7 {strides = array<i32>} : memref<16x128xf32, #tpu.memory_space<vmem>>, vector<16x128xf32>,
    %c0_i32_8 = arith.constant 0 : i32
    %9 = arith.cmpi eq, %arg1, %c0_i32_8 : i32
    %10 = arith.extui %9 : i1 to i32
    %c0_i32_9 = arith.constant 0 : i32
    %11 = arith.cmpi ne, %10, %c0_i32_9 : i32
    scf.if %11 {
      %c0_10 = arith.constant 0 : index
      %c0_11 = arith.constant 0 : index
      %12 = vector.load %arg9[%c0_10, %c0_11] : memref<16x128xf32, #tpu.memory_space<vmem>>, vector<16x128xf32>
      %c0_12 = arith.constant 0 : index
      %c0_13 = arith.constant 0 : index
      %13 = vector.load %arg4[%c0_12, %c0_13] : memref<1x128xf32, #tpu.memory_space<vmem>>, vector<1x128xf32>
      %14 = vector.broadcast %13 : vector<1x128xf32> to vector<16x128xf32>
      %15 = arith.addf %12, %14 : vector<16x128xf32>
      %c0_14 = arith.constant 0 : index
      %c0_15 = arith.constant 0 : index
      %16 = vector.load %arg5[%c0_14, %c0_15] : memref<16x128xf32, #tpu.memory_space<vmem>>, vector<16x128xf32>
      %17 = arith.addf %15, %16 : vector<16x128xf32>
      %cst_16 = arith.constant dense<0.000000e+00> : vector<16xf32>
      %18 = vector.multi_reduction <add>, %17, %cst_16 [1] : vector<16x128xf32> to vector<16xf32>
      %19 = vector.shape_cast %18 : vector<16xf32> to vector<16x1xf32>
      %cst_17 = arith.constant 1.280000e+02 : f32
      %20 = vector.broadcast %cst_17 : f32 to vector<16x1xf32>
      %21 = arith.divf %19, %20 : vector<16x1xf32>
      %22 = vector.broadcast %21 : vector<16x1xf32> to vector<16x128xf32>
      %23 = arith.subf %17, %22 : vector<16x128xf32>
      %24 = arith.mulf %23, %23 : vector<16x128xf32>
      %cst_18 = arith.constant dense<0.000000e+00> : vector<16xf32>
      %25 = vector.multi_reduction <add>, %24, %cst_18 [1] : vector<16x128xf32> to vector<16xf32>
      %26 = vector.shape_cast %25 : vector<16xf32> to vector<16x1xf32>
      %cst_19 = arith.constant 1.280000e+02 : f32
      %27 = vector.broadcast %cst_19 : f32 to vector<16x1xf32>
      %28 = arith.divf %26, %27 : vector<16x1xf32>
      %cst_20 = arith.constant 9.99999996E-13 : f32
      %29 = vector.broadcast %cst_20 : f32 to vector<16x1xf32>
      %30 = arith.addf %28, %29 : vector<16x1xf32>
      %31 = math.rsqrt %30 : vector<16x1xf32>
      %c0_21 = arith.constant 0 : index
      %c0_22 = arith.constant 0 : index
      %32 = vector.load %arg6[%c0_21, %c0_22] : memref<1x128xf32, #tpu.memory_space<vmem>>, vector<1x128xf32>
      %33 = vector.broadcast %31 : vector<16x1xf32> to vector<16x128xf32>
      %34 = vector.broadcast %32 : vector<1x128xf32> to vector<16x128xf32>
      %35 = arith.mulf %33, %34 : vector<16x128xf32>
      %36 = arith.mulf %23, %35 : vector<16x128xf32>
      %c0_23 = arith.constant 0 : index
      %c0_24 = arith.constant 0 : index
      %37 = vector.load %arg7[%c0_23, %c0_24] : memref<1x128xf32, #tpu.memory_space<vmem>>, vector<1x128xf32>
      %38 = vector.broadcast %37 : vector<1x128xf32> to vector<16x128xf32>
      %39 = arith.addf %36, %38 : vector<16x128xf32>
      %c0_25 = arith.constant 0 : index
      %c0_26 = arith.constant 0 : index
      %40 = vector.load %arg8[%c0_25, %c0_26] : memref<16x128xf32, #tpu.memory_space<vmem>>, vector<16x128xf32>
      tpu.vector_store %arg8[%c0_25, %c0_26], %39 {strides = array<i32>} : memref<16x128xf32, #tpu.memory_space<vmem>>, vector<16x128xf32>,
    } else {
    }
    return
  }
  func.func @transform_0(%arg0: i32, %arg1: i32) -> (i32, i32) {
    %c0_i32 = arith.constant 0 : i32
    return %arg0, %arg1 : i32, i32
  }
  func.func @transform_1(%arg0: i32, %arg1: i32) -> (i32, i32) {
    %c0_i32 = arith.constant 0 : i32
    %c0_i32_0 = arith.constant 0 : i32
    return %arg1, %c0_i32 : i32, i32
  }
  func.func @transform_2(%arg0: i32, %arg1: i32) -> (i32, i32) {
    %c0_i32 = arith.constant 0 : i32
    %c0_i32_0 = arith.constant 0 : i32
    %c0_i32_1 = arith.constant 0 : i32
    return %c0_i32, %c0_i32_0 : i32, i32
  }
  func.func @transform_3(%arg0: i32, %arg1: i32) -> (i32, i32) {
    %c0_i32 = arith.constant 0 : i32
    %c0_i32_0 = arith.constant 0 : i32
    return %arg0, %c0_i32 : i32, i32
  }
  func.func @transform_4(%arg0: i32, %arg1: i32) -> (i32, i32) {
    %c0_i32 = arith.constant 0 : i32
    %c0_i32_0 = arith.constant 0 : i32
    %c0_i32_1 = arith.constant 0 : i32
    return %c0_i32, %c0_i32_0 : i32, i32
  }
  func.func @transform_5(%arg0: i32, %arg1: i32) -> (i32, i32) {
    %c0_i32 = arith.constant 0 : i32
    %c0_i32_0 = arith.constant 0 : i32
    %c0_i32_1 = arith.constant 0 : i32
    return %c0_i32, %c0_i32_0 : i32, i32
  }
  func.func @transform_6(%arg0: i32, %arg1: i32) -> (i32, i32) {
    %c0_i32 = arith.constant 0 : i32
    %c0_i32_0 = arith.constant 0 : i32
    return %arg0, %c0_i32 : i32, i32
  }
}

</mosaic_0001>

<bundles_post_ra>
// kernel: tpu_custom_call.1
= control target key start
LH: loop header
LB: loop body
LE: loop exit
PB: predicated region body
PF: predicated region fallthrough
CT: control target
= control target key end

     0   :  { %11 = vsyncpa [#allocation4], 0  ;;  %s571_s0 = inlined_call_operand.hbm [shape: f32[16,256], index: 0, kind: input, shape index: {}]   ;;  %s572_s1 = inlined_call_operand.hbm [shape: f32[256,128], index: 1, kind: input, shape index: {}]   ;;  %s573_s2 = inlined_call_operand.vmem [shape: f32[1,128], index: 2, kind: input, shape index: {}]   ;;  %s574_s3 = inlined_call_operand.hbm [shape: f32[16,128], index: 3, kind: input, shape index: {}]   ;;  %s575_s4 = inlined_call_operand.vmem [shape: f32[1,128], index: 4, kind: input, shape index: {}]   ;;  %s576_s5 = inlined_call_operand.vmem [shape: f32[1,128], index: 5, kind: input, shape index: {}]   ;;  %s577_s6 = inlined_call_operand.hbm [shape: f32[16,128], index: 6, kind: output, shape index: {}]  }
   0x1   :  { %12 = vsyncpa [#allocation7], 0 }
   0x2   :  { %13 = vsyncpa [#allocation5], 0  ;;  %s462_s21 = smov [#allocation6]   ;;  %s368_s25 = scalar_lea.hbm %s572_s1, 4096 }
   0x3   :  { %s31_s22 = sshll.u32 %s462_s21, 4  ;;  %p369_p0 = scmp.ne.s32.totalorder %s572_s1, %s368_s25  ;;  %s32_s22 = int_to_ptr.vmem [resolvable:$true] %s31_s22 }
   0x4   :  { %p372_p1 = scmp.lt.u32.totalorder %s368_s25, %s572_s1 }
   0x6   :  { %p374_p2 = pnand %p372_p1, %p369_p0 }
   0x8   :  { %377 = shalt.err (!%p374_p2)
}
   0x9   :  { %s378_s30 = scalar_lea.vmem %s32_s22, 4096  ;;  %p383_p4 = scmp.lt.s32.totalorder %s32_s22, %s32_s22 }
   0xa   :  { %p379_p3 = scmp.ne.s32.totalorder %s32_s22, %s378_s30  ;;  %p384_p5 = scmp.lt.s32.totalorder %s378_s30, %s378_s30 }
   0xc   :  { %p385_p6 = por %p384_p5, %p383_p4 }
   0xe   :  { %p386_p7 = pnand %p385_p6, %p379_p3 }
  0x10   :  { %389 = shalt.err (!%p386_p7)
}
  0x11   :  { %s463_s7 = smov 128   ;;  %s464_s8 = smov 8  }
  0x12   :  { %37 = dma.hbm_to_vmem [thread:$0]  %s572_s1, 4096, %s32_s22, [#allocation7], %s463_s7, %s463_s7, %s464_s8  }
  0x13   :  { %s465_s11 = smov [#allocation3]   ;;  %s390_s15 = scalar_lea.hbm %s571_s0, 512 }
  0x14   :  { %s19_s12 = sshll.u32 %s465_s11, 4  ;;  %p391_p8 = scmp.ne.s32.totalorder %s571_s0, %s390_s15  ;;  %s20_s12 = int_to_ptr.vmem [resolvable:$true] %s19_s12 }
  0x15   :  { %p394_p9 = scmp.lt.u32.totalorder %s390_s15, %s571_s0 }
  0x17   :  { %p396_p10 = pnand %p394_p9, %p391_p8 }
  0x19   :  { %399 = shalt.err (!%p396_p10)
}
  0x1a   :  { %s400_s20 = scalar_lea.vmem %s20_s12, 512  ;;  %p405_p12 = scmp.lt.s32.totalorder %s20_s12, %s20_s12 }
  0x1b   :  { %p401_p11 = scmp.ne.s32.totalorder %s20_s12, %s400_s20  ;;  %p406_p13 = scmp.lt.s32.totalorder %s400_s20, %s400_s20 }
  0x1d   :  { %p407_p0 = por %p406_p13, %p405_p12 }
  0x1f   :  { %p408_p1 = pnand %p407_p0, %p401_p11 }
  0x21   :  { %411 = shalt.err (!%p408_p1)
}
  0x22   :  { %s466_s1 = smov 256   ;;  %s467_s21 = smov 16  }
  0x23   :  { %25 = dma.hbm_to_vmem [thread:$0]  %s571_s0, 512, %s20_s12, [#allocation4], %s466_s1, %s466_s1, %s467_s21  }
  0x24   :  { %s468_s24 = smov [#allocation8]   ;;  %s412_s28 = scalar_lea.hbm %s574_s3, 256 }
  0x25   :  { %s45_s25 = sshll.u32 %s468_s24, 4  ;;  %p413_p2 = scmp.ne.s32.totalorder %s574_s3, %s412_s28  ;;  %s46_s25 = int_to_ptr.vmem [resolvable:$true] %s45_s25 }
  0x26   :  { %p416_p3 = scmp.lt.u32.totalorder %s412_s28, %s574_s3 }
  0x28   :  { %p418_p4 = pnand %p416_p3, %p413_p2 }
  0x2a   :  { %421 = shalt.err (!%p418_p4)
}
  0x2b   :  { %s422_s11 = scalar_lea.vmem %s46_s25, 256  ;;  %p427_p6 = scmp.lt.s32.totalorder %s46_s25, %s46_s25 }
  0x2c   :  { %p423_p5 = scmp.ne.s32.totalorder %s46_s25, %s422_s11  ;;  %p428_p7 = scmp.lt.s32.totalorder %s422_s11, %s422_s11 }
  0x2e   :  { %p429_p8 = por %p428_p7, %p427_p6 }
  0x30   :  { %p430_p9 = pnand %p429_p8, %p423_p5 }
  0x32   :  { %433 = shalt.err (!%p430_p9)
}
  0x33   :  { %51 = dma.hbm_to_vmem [thread:$0]  %s574_s3, 256, %s46_s25, [#allocation7], %s463_s7, %s463_s7, %s464_s8  }
  0x34   :  { %456 = dma.done.wait [#allocation4], 512  }
  0x35   :  { %457 = vsyncadd [#allocation4], 4294966784 }
  0x36   :  { %458 = dma.done.wait [#allocation7], 4352  }
  0x37   :  { %459 = vsyncadd [#allocation7], 4294962944  ;;  %v93_v0 = vld [vmem:[#allocation6 + $0x80] sm:$0xff]  ;;  %v94_v1 = vld [vmem:[#allocation6 + $0x88] sm:$0xff]  ;;  %s469_s17 = smov [#allocation9]  }
  0x38   :  { %v77_v2 = vld [vmem:[#allocation6] sm:$0xff]  ;;  %v308_v3 = vpack.c.bf16 %v94_v1, %v93_v0  ;;  %v78_v4 = vld [vmem:[#allocation6 + $0x8] sm:$0xff]  ;;  %v95_v5 = vld [vmem:[#allocation6 + $0x90] sm:$0xff]  ;;  %s254_s18 = sshll.u32 %s469_s17, 4  ;;  %s255_s18 = int_to_ptr.vmem [resolvable:$true] %s254_s18 }
  0x39   :  { %v96_v6 = vld [vmem:[#allocation6 + $0x98] sm:$0xff]  ;;  %v310_v7 = vpack.c.bf16 %v78_v4, %v77_v2  ;;  %v79_v9 = vld [vmem:[#allocation6 + $0x10] sm:$0xff]  ;;  %v97_v11 = vld [vmem:[#allocation6 + $0xa0] sm:$0xff]  ;;  %s434_s19 = scalar_lea.vmem %s255_s18, 256  ;;  %p439_p11 = scmp.lt.s32.totalorder %s255_s18, %s255_s18 }
  0x3a   :  { %v312_v8 = vpack.c.bf16 %v96_v6, %v95_v5  ;;  %v80_v10 = vld [vmem:[#allocation6 + $0x18] sm:$0xff]  ;;  %309 = vmatprep.subr.bf16.mxu0 %v308_v3  ;;  %340 = vmatprep.subr.bf16.mxu1 %v308_v3  ;;  %v98_v12 = vld [vmem:[#allocation6 + $0xa8] sm:$0xff]  ;;  %v81_v15 = vld [vmem:[#allocation6 + $0x20] sm:$0xff]  ;;  %p435_p10 = scmp.ne.s32.totalorder %s255_s18, %s434_s19  ;;  %p440_p12 = scmp.lt.s32.totalorder %s434_s19, %s434_s19 }
  0x3b   :  { %311 = vmatpush3.bf16.msra.mxu0 %v310_v7  ;;  %348 = vmatpush3.bf16.msra.mxu1 %v310_v7  ;;  %v314_v13 = vpack.c.bf16 %v80_v10, %v79_v9  ;;  %v316_v14 = vpack.c.bf16 %v98_v12, %v97_v11  ;;  %v82_v16 = vld [vmem:[#allocation6 + $0x28] sm:$0xff]  ;;  %v99_v17 = vld [vmem:[#allocation6 + $0xb0] sm:$0xff]  ;;  %v100_v18 = vld [vmem:[#allocation6 + $0xb8] sm:$0xff] }
  0x3c   :  { %313 = vmatprep.subr.bf16.mxu0 %v312_v8  ;;  %341 = vmatprep.subr.bf16.mxu1 %v312_v8  ;;  %v318_v19 = vpack.c.bf16 %v82_v16, %v81_v15  ;;  %v320_v20 = vpack.c.bf16 %v100_v18, %v99_v17  ;;  %v83_v21 = vld [vmem:[#allocation6 + $0x30] sm:$0xff]  ;;  %v84_v22 = vld [vmem:[#allocation6 + $0x38] sm:$0xff]  ;;  %v101_v23 = vld [vmem:[#allocation6 + $0xc0] sm:$0xff]  ;;  %p441_p13 = por %p440_p12, %p439_p11 }
  0x3d   :  { %v102_v24 = vld [vmem:[#allocation6 + $0xc8] sm:$0xff]  ;;  %v76_v26 = vld [vmem:[#allocation3 + $0x18] sm:$0xff]  ;;  %v322_v27 = vpack.c.bf16 %v84_v22, %v83_v21  ;;  %v85_v29 = vld [vmem:[#allocation6 + $0x40] sm:$0xff] }
  0x3e   :  { %v74_v25 = vld [vmem:[#allocation3 + $0x8] sm:$0xff]  ;;  %v324_v28 = vpack.c.bf16 %v102_v24, %v101_v23  ;;  %v103_v31 = vld [vmem:[#allocation6 + $0xd0] sm:$0xff]  ;;  %v104_v32 = vld [vmem:[#allocation6 + $0xd8] sm:$0xff]  ;;  %178 = vmatprep.mubr.f32.mxu1 %v76_v26  ;;  %p442_p0 = pnand %p441_p13, %p435_p10 }
  0x3f   :  { %315 = vmatpush3.bf16.msra.mxu0 %v314_v13  ;;  %349 = vmatpush3.bf16.msra.mxu1 %v314_v13  ;;  %v86_v30 = vld [vmem:[#allocation6 + $0x48] sm:$0xff]  ;;  %v328_v34 = vpack.c.bf16 %v104_v32, %v103_v31  ;;  %v87_v35 = vld [vmem:[#allocation6 + $0x50] sm:$0xff]  ;;  %v88_v36 = vld [vmem:[#allocation6 + $0x58] sm:$0xff] }
  0x40   :  { %317 = vmatprep.subr.bf16.mxu0 %v316_v14  ;;  %342 = vmatprep.subr.bf16.mxu1 %v316_v14  ;;  %v326_v33 = vpack.c.bf16 %v86_v30, %v85_v29  ;;  %v105_v37 = vld [vmem:[#allocation6 + $0xe0] sm:$0xff]  ;;  %v106_v38 = vld [vmem:[#allocation6 + $0xe8] sm:$0xff]  ;;  %v330_v39 = vpack.c.bf16 %v88_v36, %v87_v35  ;;  %v107_v43 = vld [vmem:[#allocation6 + $0xf0] sm:$0xff] }
  0x41   :  { %173 = vmatprep.mubr.f32.mxu0 %v74_v25  ;;  %v332_v40 = vpack.c.bf16 %v106_v38, %v105_v37  ;;  %v89_v41 = vld [vmem:[#allocation6 + $0x60] sm:$0xff]  ;;  %v90_v42 = vld [vmem:[#allocation6 + $0x68] sm:$0xff]  ;;  %v108_v44 = vld [vmem:[#allocation6 + $0xf8] sm:$0xff] }
  0x42   :  { %v334_v45 = vpack.c.bf16 %v90_v42, %v89_v41  ;;  %v336_v46 = vpack.c.bf16 %v108_v44, %v107_v43  ;;  %v91_v47 = vld [vmem:[#allocation6 + $0x70] sm:$0xff]  ;;  %v92_v48 = vld [vmem:[#allocation6 + $0x78] sm:$0xff]  ;;  %v73_v50 = vld [vmem:[#allocation3] sm:$0xff] }
  0x43   :  { %319 = vmatpush3.bf16.msra.mxu0 %v318_v19  ;;  %350 = vmatpush3.bf16.msra.mxu1 %v318_v19  ;;  %v338_v49 = vpack.c.bf16 %v92_v48, %v91_v47  ;;  %v75_v51 = vld [vmem:[#allocation3 + $0x10] sm:$0xff]  ;;  %v267_v55 = vld [vmem:[%s573_s2] ss:$0 sm:$0xff]  ;;  %v203_v62 = vld [vmem:[#allocation8 + $0x8] sm:$0xff] }
  0x44   :  { %321 = vmatprep.subr.bf16.mxu0 %v320_v20  ;;  %343 = vmatprep.subr.bf16.mxu1 %v320_v20  ;;  %v202_v59 = vld [vmem:[#allocation8] sm:$0xff] }
  0x45   :  { %v268_v15 = vld [vmem:[%s575_s4] ss:$0 sm:$0xff] }
  0x46   :  { %v269_v18 = vld [vmem:[%s576_s5] ss:$0 sm:$0xff] }
  0x47   :  { %323 = vmatpush3.bf16.msra.mxu0 %v322_v27  ;;  %351 = vmatpush3.bf16.msra.mxu1 %v322_v27 }
  0x48   :  { %325 = vmatprep.subr.bf16.mxu0 %v324_v28  ;;  %344 = vmatprep.subr.bf16.mxu1 %v324_v28 }
  0x4b   :  { %327 = vmatpush3.bf16.msra.mxu0 %v326_v33  ;;  %352 = vmatpush3.bf16.msra.mxu1 %v326_v33 }
  0x4c   :  { %329 = vmatprep.subr.bf16.mxu0 %v328_v34  ;;  %345 = vmatprep.subr.bf16.mxu1 %v328_v34 }
  0x4f   :  { %331 = vmatpush3.bf16.msra.mxu0 %v330_v39  ;;  %353 = vmatpush3.bf16.msra.mxu1 %v330_v39 }
  0x50   :  { %333 = vmatprep.subr.bf16.mxu0 %v332_v40  ;;  %346 = vmatprep.subr.bf16.mxu1 %v332_v40 }
  0x53   :  { %335 = vmatpush3.bf16.msra.mxu0 %v334_v45  ;;  %354 = vmatpush3.bf16.msra.mxu1 %v334_v45 }
  0x54   :  { %337 = vmatprep.subr.bf16.mxu0 %v336_v46  ;;  %347 = vmatprep.subr.bf16.mxu1 %v336_v46 }
  0x57   :  { %339 = vmatpush3.bf16.msra.mxu0 %v338_v49  ;;  %355 = vmatpush3.bf16.msra.mxu1 %v338_v49 }
  0x5a   :  { %174 = vmatmul.mubr.f32.vlgmr.msra.gmra.mrb[0].mxu0 %v73_v50  ;;  %179 = vmatmul.mubr.f32.vlgmr.msra.gmra.mrb[0].mxu1 %v75_v51 }
 0x12d   :  { %v302_v52 = vpop.f32.mrb[0].mxu0  ;;  %v305_v53 = vpop.f32.mrb[0].mxu1 }
 0x12e   :  { %v303_v54 = vpop.f32.mrb[1].mxu0  ;;  %v306_v56 = vpop.f32.mrb[1].mxu1 }
 0x12f   :  { %v304_v57 = vadd.f32 %v303_v54, %v302_v52  ;;  %v307_v58 = vadd.f32 %v306_v56, %v305_v53 }
 0x131   :  { %v200_v60 = vadd.f32 %v304_v57, %v267_v55  ;;  %v201_v61 = vadd.f32 %v307_v58, %v267_v55 }
 0x133   :  { %v204_v63 = vadd.f32 %v202_v59, %v200_v60  ;;  %v205_v0 = vadd.f32 %v203_v62, %v201_v61 }
 0x135   :  { %206 = vadd.xlane.f32.xlu0 %v204_v63 }
 0x139   :  { %208 = vadd.xlane.f32.xlu0 %v205_v0 }
 0x1c2   :  { %v207_v1 = vpop.xlane.xlu0 %206 }
 0x1c3   :  { %v211_v2 = vmul.f32 0.0078125, %v207_v1 }
 0x1c5   :  { %v213_v3 = vsub.f32 %v204_v63, %v211_v2 }
 0x1c6   :  { %v209_v4 = vpop.xlane.xlu0 %208 }
 0x1c7   :  { %v212_v5 = vmul.f32 0.0078125, %v209_v4  ;;  %v215_v6 = vmul.f32 %v213_v3, %v213_v3 }
 0x1c9   :  { %v214_v7 = vsub.f32 %v205_v0, %v212_v5  ;;  %217 = vadd.xlane.f32.xlu1 %v215_v6 }
 0x1cb   :  { %v216_v8 = vmul.f32 %v214_v7, %v214_v7 }
 0x1cd   :  { %219 = vadd.xlane.f32.xlu1 %v216_v8 }
 0x256   :  { %v218_v9 = vpop.xlane.xlu1 %217 }
 0x257   :  { %v221_v10 = vmul.f32 0.0078125, %v218_v9 }
 0x259   :  { %v223_v11 = vadd.f32 1e-12, %v221_v10 }
 0x25a   :  { %v220_v12 = vpop.xlane.xlu1 %219 }
 0x25b   :  { %364 = vrsqrt.f32 %v223_v11  ;;  %v222_v13 = vmul.f32 0.0078125, %v220_v12 }
 0x25d   :  { %v224_v14 = vadd.f32 1e-12, %v222_v13 }
 0x25f   :  { %366 = vrsqrt.f32 %v224_v14 }
 0x265   :  { %v365_v16 = vpop.eup %364 }
 0x266   :  { %v234_v17 = vmul.f32 %v365_v16, %v268_v15 }
 0x268   :  { %v236_v19 = vmul.f32 %v234_v17, %v213_v3 }
 0x269   :  { %v367_v20 = vpop.eup %366 }
 0x26a   :  { %v235_v21 = vmul.f32 %v367_v20, %v268_v15  ;;  %v245_v22 = vadd.f32 %v269_v18, %v236_v19 }
 0x26c   :  { %v237_v23 = vmul.f32 %v235_v21, %v214_v7  ;;  %247 = vst [vmem:[#allocation9] sm:$0xff] %v245_v22 }
 0x26e   :  { %v246_v24 = vadd.f32 %v269_v18, %v237_v23 }
 0x270   :  { %248 = vst [vmem:[#allocation9 + $0x8] sm:$0xff] %v246_v24 }
 0x271   :  { %445 = shalt.err (!%p442_p0)
}
 0x272   :  { %s446_s20 = scalar_lea.hbm %s577_s6, 256 }
 0x273   :  { %p447_p1 = scmp.ne.s32.totalorder %s577_s6, %s446_s20  ;;  %p450_p2 = scmp.lt.u32.totalorder %s446_s20, %s577_s6 }
 0x275   :  { %p452_p3 = pnand %p450_p2, %p447_p1 }
 0x277   :  { %455 = shalt.err (!%p452_p3)
}
 0x278   :  { %260 = dma.vmem_to_hbm [thread:$0]  %s255_s18, 256, %s577_s6, [#allocation5], %s463_s7, %s463_s7, %s464_s8  }
 0x279   :  { %460 = dma.done.wait [#allocation5], 256  }
 0x27a   :  { %461 = vsyncadd [#allocation5], 4294967040 }
 0x27b   :  { %264 = vsyncpa [#allocation4], 1 }
 0x27c   :  { %265 = vsyncpa [#allocation7], 1 }
 0x27d   :  { %266 = vsyncpa [#allocation5], 1 }

</bundles_post_ra>
